<compile_context>
chip_gen: v5e
topology: v5e:2x2
jax: 0.10.0
libtpu: 0.0.40
codegen_flags: <defaults>
</compile_context>

<pallas_src>
import jax
import jax.numpy as jnp
from jax.experimental import pallas as pl
from jax.experimental.pallas import tpu as pltpu

EPS = 1e-5          # nn.BatchNorm1d default
DROP_PROB = 0.3     # module's drop_prob
LANE = 128          # TPU lane width


# ------------------------------------------------ conv3x3 + ReLU + avg-pool ---

def conv3x3_relu_gap(x_nchw, w, b, *, tile_co=LANE, tile_m=256):
    """Fused Conv2d(3x3, stride 1, pad 1) -> ReLU -> global average pool.

    Returns pooled features [N, Cout] in bf16 (== AdaptiveAvgPool2d((1,1)) + view).
    """
    N, Cin, H, W = x_nchw.shape
    Cout = w.shape[0]
    co_pad = pl.cdiv(Cout, tile_co) * tile_co
    M = H * W
    K = 9 * Cin
    k_pad = pl.cdiv(K, 8) * 8                 # 27 -> 32 (lane-dense-ish LHS)
    tm = min(tile_m, pl.cdiv(M, 8) * 8)       # spatial row block
    m_pad = pl.cdiv(M, tm) * tm

    # im2col in the wrapper: taps packed into the contraction dim, bf16.
    x = jnp.transpose(x_nchw, (0, 2, 3, 1))               # NHWC
    xp = jnp.pad(x, ((0, 0), (1, 1), (1, 1), (0, 0)))     # [N, H+2, W+2, Cin]
    cols = [xp[:, kh:kh + H, kw:kw + W, :]
            for kh in range(3) for kw in range(3)]
    x_col = jnp.concatenate(cols, axis=-1).reshape(N, M, K)
    x_col = jnp.pad(x_col, ((0, 0), (0, m_pad - M), (0, k_pad - K)))
    x_col = x_col.astype(jnp.bfloat16)

    # Weights [Cout, Cin, 3, 3] -> [k_pad, co_pad]; row = (kh*3+kw)*Cin + cin.
    w9 = jnp.transpose(w, (2, 3, 1, 0)).reshape(K, Cout)
    w9 = jnp.pad(w9, ((0, k_pad - K), (0, co_pad - Cout))).astype(jnp.bfloat16)
    b2 = jnp.pad(b, (0, co_pad - Cout)).reshape(1, co_pad).astype(jnp.float32)

    # Pool weights: 1/(H*W) on valid rows, 0 on padded rows (mask+scale fused).
    pool = jnp.where(jnp.arange(m_pad) < M, 1.0 / (H * W), 0.0)
    pool = pool.reshape(m_pad, 1).astype(jnp.float32)

    def kernel(x_ref, w_ref, b_ref, p_ref, o_ref, acc_ref):
        # x_ref: [tm, k_pad] bf16 | w_ref: [k_pad, tile_co] bf16
        # b_ref: [1, tile_co] f32 | p_ref: [tm, 1] f32
        # o_ref: [1, tile_co] bf16 (pooled) | acc_ref: [1, tile_co] f32 scratch
        m = pl.program_id(2)

        @pl.when(m == 0)
        def _():
            acc_ref[...] = jnp.zeros_like(acc_ref)

        y = jnp.dot(x_ref[...], w_ref[...], preferred_element_type=jnp.float32)
        y = jnp.maximum(y + b_ref[...], 0.0)               # bias + ReLU (f32)
        acc_ref[...] += jnp.sum(y * p_ref[...], axis=0, keepdims=True)

        @pl.when(m == pl.num_programs(2) - 1)
        def _():
            o_ref[...] = acc_ref[...].astype(o_ref.dtype)

    out = pl.pallas_call(
        kernel,
        out_shape=jax.ShapeDtypeStruct((N, 1, co_pad), jnp.bfloat16),
        grid=(N, co_pad // tile_co, m_pad // tm),
        in_specs=[
            pl.BlockSpec((None, tm, k_pad), lambda n, co, m: (n, m, 0)),
            pl.BlockSpec((k_pad, tile_co), lambda n, co, m: (0, co)),
            pl.BlockSpec((1, tile_co), lambda n, co, m: (0, co)),
            pl.BlockSpec((tm, 1), lambda n, co, m: (m, 0)),
        ],
        out_specs=pl.BlockSpec((None, 1, tile_co), lambda n, co, m: (n, 0, co)),
        scratch_shapes=[pltpu.VMEM((1, tile_co), jnp.float32)],
        compiler_params=pltpu.CompilerParams(
            dimension_semantics=("parallel", "parallel", "arbitrary"),
            vmem_limit_bytes=32 * 1024 * 1024,
        ),
    )(x_col, w9, b2, pool)
    return out.reshape(N, co_pad)[:, :Cout]


# -------------------------------------- Linear -> BatchNorm1d -> Dropout head ---

def embed_bn_dropout(feat, w_embed, b_embed, gamma, beta, drop_key, *, tile_e=LANE):
    """Fused head; BN uses training-mode full-batch statistics (biased var)."""
    N, Cf = feat.shape
    E = w_embed.shape[0]
    e_pad = pl.cdiv(E, tile_e) * tile_e

    wT = jnp.pad(w_embed.T, ((0, 0), (0, e_pad - E))).astype(jnp.bfloat16)
    b2 = jnp.pad(b_embed, (0, e_pad - E)).reshape(1, e_pad).astype(jnp.float32)
    g2 = jnp.pad(gamma, (0, e_pad - E)).reshape(1, e_pad).astype(jnp.float32)
    bt2 = jnp.pad(beta, (0, e_pad - E)).reshape(1, e_pad).astype(jnp.float32)
    # Inverted-dropout keep mask as int8 (scale applied in-kernel).
    # TODO(synk): pattern will not bit-match torch's dropout RNG stream.
    keep = jax.random.bernoulli(drop_key, 1.0 - DROP_PROB, (N, e_pad))
    keep = keep.astype(jnp.int8)
    inv_keep = 1.0 / (1.0 - DROP_PROB)

    def kernel(feat_ref, wT_ref, b_ref, g_ref, bt_ref, m_ref, o_ref):
        z = jnp.dot(feat_ref[...], wT_ref[...],
                    preferred_element_type=jnp.float32) + b_ref[...]
        mean = jnp.mean(z, axis=0, keepdims=True)                 # batch stats
        var = jnp.mean((z - mean) ** 2, axis=0, keepdims=True)    # biased var
        zn = (z - mean) * jax.lax.rsqrt(var + EPS)
        zn = zn * g_ref[...] + bt_ref[...]
        o_ref[...] = zn * (m_ref[...].astype(jnp.float32) * inv_keep)

    out = pl.pallas_call(
        kernel,
        out_shape=jax.ShapeDtypeStruct((N, e_pad), jnp.float32),
        grid=(e_pad // tile_e,),
        in_specs=[
            pl.BlockSpec((N, Cf), lambda e: (0, 0)),        # resident across tiles
            pl.BlockSpec((Cf, tile_e), lambda e: (0, e)),
            pl.BlockSpec((1, tile_e), lambda e: (0, e)),
            pl.BlockSpec((1, tile_e), lambda e: (0, e)),
            pl.BlockSpec((1, tile_e), lambda e: (0, e)),
            pl.BlockSpec((N, tile_e), lambda e: (0, e)),
        ],
        out_specs=pl.BlockSpec((N, tile_e), lambda e: (0, e)),
        compiler_params=pltpu.CompilerParams(
            dimension_semantics=("parallel",),
        ),
    )(feat, wT, b2, g2, bt2, keep)
    return out[:, :E]


# ---------------------------------------------------------------- forward ---

def encoder_cnn_forward(images, params, drop_key):
    # TODO(synk): the pretrained ResNet-50 backbone (7x7 stem + maxpool + 16
    # bottleneck residual blocks with their BatchNorms) is not replicated; a
    # single fused conv3x3+ReLU+global-average-pool Pallas kernel stands in
    # for `self.resnet(images)` at small scale.
    feat = conv3x3_relu_gap(images, params["conv_w"], params["conv_b"])
    return embed_bn_dropout(feat, params["embed_w"], params["embed_b"],
                            params["gamma"], params["beta"], drop_key)


# ------------------------------------------------------------------- main ---

if __name__ == "__main__":
    key = jax.random.PRNGKey(0)
    k1, k2, k3, k4, kdrop = jax.random.split(key, 5)

    N, C_in, H, W = 2, 3, 16, 16       # small NCHW input (PyTorch convention)
    C_feat = 256                       # stand-in for resnet.fc.in_features (=2048)
    embed_size = 32

    images = jax.random.normal(k1, (N, C_in, H, W), jnp.float32)
    params = {
        "conv_w":  0.1 * jax.random.normal(k2, (C_feat, C_in, 3, 3), jnp.float32),
        "conv_b":  jnp.zeros((C_feat,), jnp.float32),
        "embed_w": 0.05 * jax.random.normal(k3, (embed_size, C_feat), jnp.float32),
        "embed_b": 0.05 * jax.random.normal(k4, (embed_size,), jnp.float32),
        "gamma":   jnp.ones((embed_size,), jnp.float32),    # BatchNorm1d init
        "beta":    jnp.zeros((embed_size,), jnp.float32),
    }

    out = encoder_cnn_forward(images, params, kdrop)
    jax.block_until_ready(out)
    assert out.shape == (N, embed_size) and out.dtype == jnp.float32
    assert bool(jnp.all(jnp.isfinite(out)))
    print("KERNEL_OK")
</pallas_src>

<mosaic_0001>
module attributes {stable_mosaic.version = 11 : i64} {
  func.func @kernel(%arg0: i32, %arg1: i32, %arg2: i32, %arg3: memref<1x256x32xbf16, #tpu.memory_space<vmem>>, %arg4: memref<32x128xbf16, #tpu.memory_space<vmem>>, %arg5: memref<1x128xf32, #tpu.memory_space<vmem>>, %arg6: memref<256x1xf32, #tpu.memory_space<vmem>>, %arg7: memref<1x1x128xbf16, #tpu.memory_space<vmem>>, %arg8: memref<1x128xf32, #tpu.memory_space<vmem>>) attributes {dimension_semantics = [#tpu.dimension_semantics<parallel>, #tpu.dimension_semantics<parallel>, #tpu.dimension_semantics<arbitrary>], iteration_bounds = array<i64: 2, 2, 1>, scalar_prefetch = 0 : i64, scratch_operands = 1 : i64, tpu.core_type = #tpu.core_type<tc>, window_params = [{transform_indices = @transform_0, window_bounds = array<i64: 1, 256, 32>}, {transform_indices = @transform_1, window_bounds = array<i64: 32, 128>}, {transform_indices = @transform_2, window_bounds = array<i64: 1, 128>}, {transform_indices = @transform_3, window_bounds = array<i64: 256, 1>}, {transform_indices = @transform_4, window_bounds = array<i64: 1, 1, 128>}]} {
    %c0_i32 = arith.constant 0 : i32
    %0 = arith.cmpi eq, %arg2, %c0_i32 : i32
    %1 = arith.extui %0 : i1 to i32
    %c0_i32_0 = arith.constant 0 : i32
    %2 = arith.cmpi ne, %1, %c0_i32_0 : i32
    scf.if %2 {
      %cst_17 = arith.constant 0.000000e+00 : f32
      %23 = vector.broadcast %cst_17 : f32 to vector<1x128xf32>
      %c0_18 = arith.constant 0 : index
      %c0_19 = arith.constant 0 : index
      %24 = vector.load %arg8[%c0_18, %c0_19] : memref<1x128xf32, #tpu.memory_space<vmem>>, vector<1x128xf32>
      tpu.vector_store %arg8[%c0_18, %c0_19], %23 {strides = array<i32>} : memref<1x128xf32, #tpu.memory_space<vmem>>, vector<1x128xf32>,
    } else {
    }
    %c0 = arith.constant 0 : index
    %c0_1 = arith.constant 0 : index
    %c0_2 = arith.constant 0 : index
    %3 = vector.load %arg3[%c0, %c0_1, %c0_2] : memref<1x256x32xbf16, #tpu.memory_space<vmem>>, vector<1x256x32xbf16>
    %4 = vector.shape_cast %3 : vector<1x256x32xbf16> to vector<256x32xbf16>
    %c0_3 = arith.constant 0 : index
    %c0_4 = arith.constant 0 : index
    %5 = vector.load %arg4[%c0_3, %c0_4] : memref<32x128xbf16, #tpu.memory_space<vmem>>, vector<32x128xbf16>
    %cst = arith.constant dense<0.000000e+00> : vector<256x128xf32>
    %6 = tpu.matmul %4, %5, %cst {dimension_numbers = #tpu.dot_dimension_numbers<[1], [0], [0], [1], [0, 0, 1, 1], [], []>} : vector<256x32xbf16>, vector<32x128xbf16>, vector<256x128xf32> -> vector<256x128xf32>
    %c0_5 = arith.constant 0 : index
    %c0_6 = arith.constant 0 : index
    %7 = vector.load %arg5[%c0_5, %c0_6] : memref<1x128xf32, #tpu.memory_space<vmem>>, vector<1x128xf32>
    %8 = vector.broadcast %7 : vector<1x128xf32> to vector<256x128xf32>
    %9 = arith.addf %6, %8 : vector<256x128xf32>
    %cst_7 = arith.constant 0.000000e+00 : f32
    %10 = vector.broadcast %cst_7 : f32 to vector<256x128xf32>
    %11 = arith.maximumf %9, %10 : vector<256x128xf32>
    %c0_8 = arith.constant 0 : index
    %c0_9 = arith.constant 0 : index
    %12 = vector.load %arg8[%c0_8, %c0_9] : memref<1x128xf32, #tpu.memory_space<vmem>>, vector<1x128xf32>
    %c0_10 = arith.constant 0 : index
    %c0_11 = arith.constant 0 : index
    %13 = vector.load %arg6[%c0_10, %c0_11] : memref<256x1xf32, #tpu.memory_space<vmem>>, vector<256x1xf32>
    %14 = vector.broadcast %13 : vector<256x1xf32> to vector<256x128xf32>
    %15 = arith.mulf %11, %14 : vector<256x128xf32>
    %cst_12 = arith.constant dense<0.000000e+00> : vector<128xf32>
    %16 = vector.multi_reduction <add>, %15, %cst_12 [0] : vector<256x128xf32> to vector<128xf32>
    %17 = vector.shape_cast %16 : vector<128xf32> to vector<1x128xf32>
    %18 = arith.addf %12, %17 : vector<1x128xf32>
    %c0_13 = arith.constant 0 : index
    %c0_14 = arith.constant 0 : index
    %19 = vector.load %arg8[%c0_13, %c0_14] : memref<1x128xf32, #tpu.memory_space<vmem>>, vector<1x128xf32>
    tpu.vector_store %arg8[%c0_13, %c0_14], %18 {strides = array<i32>} : memref<1x128xf32, #tpu.memory_space<vmem>>, vector<1x128xf32>,
    %c0_i32_15 = arith.constant 0 : i32
    %20 = arith.cmpi eq, %arg2, %c0_i32_15 : i32
    %21 = arith.extui %20 : i1 to i32
    %c0_i32_16 = arith.constant 0 : i32
    %22 = arith.cmpi ne, %21, %c0_i32_16 : i32
    scf.if %22 {
      %c0_17 = arith.constant 0 : index
      %c0_18 = arith.constant 0 : index
      %23 = vector.load %arg8[%c0_17, %c0_18] : memref<1x128xf32, #tpu.memory_space<vmem>>, vector<1x128xf32>
      %24 = arith.truncf %23 : vector<1x128xf32> to vector<1x128xbf16>
      %c0_19 = arith.constant 0 : index
      %c0_20 = arith.constant 0 : index
      %c0_21 = arith.constant 0 : index
      %25 = vector.load %arg7[%c0_19, %c0_20, %c0_21] : memref<1x1x128xbf16, #tpu.memory_space<vmem>>, vector<1x1x128xbf16>
      %26 = vector.shape_cast %25 : vector<1x1x128xbf16> to vector<1x128xbf16>
      %27 = vector.shape_cast %24 : vector<1x128xbf16> to vector<1x1x128xbf16>
      tpu.vector_store %arg7[%c0_19, %c0_20, %c0_21], %27 {strides = array<i32>} : memref<1x1x128xbf16, #tpu.memory_space<vmem>>, vector<1x1x128xbf16>,
    } else {
    }
    return
  }
  func.func @transform_0(%arg0: i32, %arg1: i32, %arg2: i32) -> (i32, i32, i32) {
    %c0_i32 = arith.constant 0 : i32
    %c0_i32_0 = arith.constant 0 : i32
    return %arg0, %arg2, %c0_i32 : i32, i32, i32
  }
  func.func @transform_1(%arg0: i32, %arg1: i32, %arg2: i32) -> (i32, i32) {
    %c0_i32 = arith.constant 0 : i32
    %c0_i32_0 = arith.constant 0 : i32
    return %c0_i32, %arg1 : i32, i32
  }
  func.func @transform_2(%arg0: i32, %arg1: i32, %arg2: i32) -> (i32, i32) {
    %c0_i32 = arith.constant 0 : i32
    %c0_i32_0 = arith.constant 0 : i32
    return %c0_i32, %arg1 : i32, i32
  }
  func.func @transform_3(%arg0: i32, %arg1: i32, %arg2: i32) -> (i32, i32) {
    %c0_i32 = arith.constant 0 : i32
    %c0_i32_0 = arith.constant 0 : i32
    return %arg2, %c0_i32 : i32, i32
  }
  func.func @transform_4(%arg0: i32, %arg1: i32, %arg2: i32) -> (i32, i32, i32) {
    %c0_i32 = arith.constant 0 : i32
    %c0_i32_0 = arith.constant 0 : i32
    return %arg0, %c0_i32, %arg1 : i32, i32, i32
  }
}

</mosaic_0001>

<bundles_post_ra>
// kernel: tpu_custom_call.1
= control target key start
LH: loop header
LB: loop body
LE: loop exit
PB: predicated region body
PF: predicated region fallthrough
CT: control target
= control target key end

     0   :  { %s1331_s15 = smov 0   ;;  %s1333_s16 = smov 0   ;;  %s1644_s0 = inlined_call_operand.vmem [shape: bf16[2,256,32], index: 0, kind: input, shape index: {}]   ;;  %s1645_s1 = inlined_call_operand.vmem [shape: bf16[32,256], index: 1, kind: input, shape index: {}]   ;;  %s1646_s2 = inlined_call_operand.vmem [shape: f32[1,256], index: 2, kind: input, shape index: {}]   ;;  %s1647_s3 = inlined_call_operand.vmem [shape: f32[256,1], index: 3, kind: input, shape index: {}]   ;;  %s1648_s4 = inlined_call_operand.vmem [shape: bf16[2,1,256], index: 4, kind: output, shape index: {}]  }
   0x1   :  { %s1335_s17 = smov 0   ;;  %s1337_s18 = smov 0  }
   0x2   :  { %s1339_s19 = smov 0   ;;  %s1341_s20 = smov 0  }
   0x3   :  { %s1343_s21 = smov 0  }
   0x4 LB: > { %s29_s22 = sadd.s32 1, %s1294_s19  ;;  %s33_s23 = sadd.s32 1, %s1298_s20  ;;  %s1302_s21 = sphi %s1343_s21, %s14_s21   ;;  %s1298_s20 = sphi %s1341_s20, %s1654_s20   ;;  %s1294_s19 = sphi %s1339_s19, %s1653_s19   ;;  %s1290_s18 = sphi %s1337_s18, %s1652_s18   ;;  %s1286_s17 = sphi %s1335_s17, %s1651_s17   ;;  %s1282_s16 = sphi %s1333_s16, %s1650_s16   ;;  %s1278_s15 = sphi %s1331_s15, %s1649_s15  }
   0x5   : > { %p31_p0 = scmp.ge.s32.totalorder %s29_s22, 2  ;;  %s68_s24 = sadd.s32 1, %s1282_s16 }
   0x6   : > { %p75_p1 = scmp.ne.s32.totalorder %s1282_s16, %s1278_s15  ;;  %p76_p2 = scmp.eq.s32.totalorder %s1302_s21, 0 }
   0x7   : > { %s1656_s22 = smov (%p31_p0, %s29_s22), 0  ;;  %s1658_s23 = smov (!%p31_p0, %s33_s23), %s1298_s20 }
   0x8   : > { %s65_s25 = ssub.s32 %s1294_s19, %s1656_s22  ;;  %p77_p3 = por %p76_p2, %p75_p1 }
   0x9   : > { %p35_p4 = scmp.ge.s32.totalorder %s1658_s23, 2  ;;  %p66_p5 = scmp.eq.s32.totalorder %s65_s25, 0 }
   0xa   : > { %p1063_p6 = scmp.ge.s32.totalorder %s1302_s21, 4 }
   0xb   : > { %s1660_s23 = smov (%p35_p4, %s1658_s23), 0 }
   0xc   : > { %s1380_s26 = scalar_select %p66_p5, %s1282_s16, %s68_s24  }
   0xd   : > { %190 = sbr.rel (%p1063_p6) target bundleno = 26 (0x1a), region = 20 }
  0x12   : > { %206 = sbr.rel (!%p77_p3) target bundleno = 26 (0x1a), region = 28  ;;  %s208_s27 = sand.u32 (%p77_p3), 1, %s1282_s16  }
  0x13   : > { %s1065_s28 = sshll.u32 (%p77_p3), %s1294_s19, 2  ;;  %s1064_s29 = sshll.u32 (%p77_p3), %s208_s27, 4 }
  0x14   : > { %s212_s6 = scalar_lea.vmem (%p77_p3), %s1645_s1, %s1065_s28  ;;  %s210_s7 = scalar_lea.vmem (%p77_p3), [#allocation3], %s1064_s29 }
  0x15   : > { %v229_v0 = vld [vmem:[%s212_s6] sm:$0xf] (%p77_p3)  ;;  %v231_v1 = vld [vmem:[%s212_s6 + $0x8] sm:$0xf] (%p77_p3)  ;;  %v233_v2 = vld [vmem:[%s212_s6 + $0x10] sm:$0xf] (%p77_p3) }
  0x16   : > { %230 = vst [vmem:[%s210_s7] sm:$0xf] (%p77_p3), %v229_v0  ;;  %v235_v3 = vld [vmem:[%s212_s6 + $0x18] sm:$0xf] (%p77_p3) }
  0x17   : > { %232 = vst [vmem:[%s210_s7 + $0x4] sm:$0xf] %v231_v1 }
  0x18   : > { %234 = vst [vmem:[%s210_s7 + $0x8] sm:$0xf] %v233_v2 }
  0x19   : > { %236 = vst [vmem:[%s210_s7 + $0xc] sm:$0xf] %v235_v3 }
  0x1a PF: > { %p1066_p7 = scmp.ge.s32.totalorder %s1302_s21, 1  ;;  %p273_p8 = scmp.lt.s32.totalorder %s1302_s21, 5 }
  0x1c   : > { %p274_p9 = pnand %p1066_p7, %p273_p8 }
  0x1d   : > { %s280_s12 = sand.u32 (!%p274_p9), 1, %s1278_s15   ;;  %p325_p10 = scmp.lt.s32.totalorder (!%p274_p9), %s1290_s18, 1 }
  0x1e   : > { %277 = sbr.rel (%p274_p9) target bundleno = 310 (0x136), region = 73  ;;  %s1067_s13 = sshll.u32 (!%p274_p9), %s280_s12, 4 }
  0x1f   : > { %s282_s25 = scalar_lea.vmem (!%p274_p9), [#allocation3], %s1067_s13  ;;  %p334_p11 = scmp.lt.s32.totalorder (!%p274_p9), %s1286_s17, 1 }
  0x23   : > { %v661_v4 = vld [vmem:[%s1647_s3 + $0x10] sm:$0xff]  ;;  %v659_v5 = vld [vmem:[%s1647_s3] sm:$0xff]  ;;  %v1304_v6 = vmov 0   ;;  %s1662_s18 = smov (!%p325_p10, %s1290_s18), 1  ;;  %v662_v10 = vld [vmem:[%s1647_s3 + $0x18] sm:$0xff]  ;;  %s1664_s17 = smov (!%p334_p11, %s1286_s17), 1 }
  0x24   : > { %1245 = vset.pattern.permute.xlu1 %v1304_v6  ;;  %1244 = vset.pattern.permute.xlu0 %v1304_v6  ;;  %v663_v7 = vld [vmem:[%s1647_s3 + $0x20] sm:$0xff]  ;;  %s1161_s15 = sshll.u32 %s1662_s18, 7  ;;  %v660_v11 = vld [vmem:[%s1647_s3 + $0x8] sm:$0xff]  ;;  %vm488_vm0 = vcmask 261120   ;;  %s336_s12 = scalar_lea.vmem %s1646_s2, %s1664_s17  ;;  %v666_v17 = vld [vmem:[%s1647_s3 + $0x38] sm:$0xff]  ;;  %vm927_vm1 = vcmask 1040384  }
  0x25   : > { %703 = vperm.xlu1 %1245, %v661_v4   ;;  %693 = vperm.xlu0 %1244, %v659_v5   ;;  %v1179_v8 = vld [vmem:[%s282_s25 + $0x8] sm:$0xff]  ;;  %v1178_v9 = vld [vmem:[%s282_s25] sm:$0xff]  ;;  %s1409_s29 = scalar_lea.vmem %s1644_s0, %s1161_s15  ;;  %vm928_vm2 = vsmask.f32 256 }
  0x26   : > { %1246 = vset.pattern.permute.xlu2 %v1304_v6  ;;  %543 = vmatpush.bf16.msra.mxu0 %v1179_v8  ;;  %v1162_v12 = vld [vmem:[%s1409_s29] sm:$0xff]  ;;  %v664_v14 = vld [vmem:[%s1647_s3 + $0x28] sm:$0xff]  ;;  %v665_v18 = vld [vmem:[%s1647_s3 + $0x30] sm:$0xff] }
  0x27   : > { %713 = vperm.xlu2 %1246, %v663_v7   ;;  %1180 = vmatpush.bf16.msra.mxu1 %v1179_v8  ;;  %v1166_v13 = vld [vmem:[%s1409_s29 + $0x20] sm:$0xff]  ;;  %v669_v20 = vld [vmem:[%s1647_s3 + $0x50] sm:$0xff]  ;;  %v668_v21 = vld [vmem:[%s1647_s3 + $0x48] sm:$0xff] }
  0x28   : > { %1181 = vmatpush.bf16.msra.mxu2 %v1179_v8  ;;  %1182 = vmatpush.bf16.msra.mxu3 %v1179_v8  ;;  %v1170_v15 = vld [vmem:[%s1409_s29 + $0x40] sm:$0xff]  ;;  %v1163_v22 = vld [vmem:[%s1409_s29 + $0x8] sm:$0xff]  ;;  %v670_v26 = vld [vmem:[%s1647_s3 + $0x58] sm:$0xff] }
  0x29   : > { %v1174_v16 = vld [vmem:[%s1409_s29 + $0x60] sm:$0xff]  ;;  %v1167_v23 = vld [vmem:[%s1409_s29 + $0x28] sm:$0xff]  ;;  %v673_v29 = vld [vmem:[%s1647_s3 + $0x70] sm:$0xff] }
  0x2a   : > { %544 = vmatpush.bf16.msra.mxu0 %v1178_v9  ;;  %v667_v19 = vld [vmem:[%s1647_s3 + $0x40] sm:$0xff]  ;;  %v1171_v24 = vld [vmem:[%s1409_s29 + $0x48] sm:$0xff]  ;;  %v674_v31 = vld [vmem:[%s1647_s3 + $0x78] sm:$0xff] }
  0x2b   : > { %1183 = vmatpush.bf16.msra.mxu1 %v1178_v9  ;;  %v1175_v25 = vld [vmem:[%s1409_s29 + $0x68] sm:$0xff]  ;;  %v671_v28 = vld [vmem:[%s1647_s3 + $0x60] sm:$0xff]  ;;  %v1164_v32 = vld [vmem:[%s1409_s29 + $0x10] sm:$0xff] }
  0x2c   : > { %1184 = vmatpush.bf16.msra.mxu2 %v1178_v9  ;;  %1185 = vmatpush.bf16.msra.mxu3 %v1178_v9  ;;  %v672_v27 = vld [vmem:[%s1647_s3 + $0x68] sm:$0xff]  ;;  %v675_v30 = vld [vmem:[%s1647_s3 + $0x80] sm:$0xff]  ;;  %v1168_v33 = vld [vmem:[%s1409_s29 + $0x30] sm:$0xff] }
  0x2d   : > { %708 = vperm.xlu1 %1245, %v662_v10   ;;  %698 = vperm.xlu0 %1244, %v660_v11   ;;  %v1172_v34 = vld [vmem:[%s1409_s29 + $0x50] sm:$0xff]  ;;  %v676_v36 = vld [vmem:[%s1647_s3 + $0x88] sm:$0xff]  ;;  %v678_v37 = vld [vmem:[%s1647_s3 + $0x98] sm:$0xff] }
  0x2e   : > { %1143 = vmatmul.msk.bf16.vlgmr.msra.gmra.mxu0 %vm488_vm0, %v1162_v12  ;;  %1147 = vmatmul.msk.bf16.vlgmr.msra.gmra.mxu1 %vm488_vm0, %v1166_v13  ;;  %v1176_v35 = vld [vmem:[%s1409_s29 + $0x70] sm:$0xff]  ;;  %v679_v39 = vld [vmem:[%s1647_s3 + $0xa0] sm:$0xff]  ;;  %v680_v41 = vld [vmem:[%s1647_s3 + $0xa8] sm:$0xff] }
  0x2f   : > { %718 = vperm.xlu2 %1246, %v664_v14   ;;  %1151 = vmatmul.msk.bf16.vlgmr.msra.gmra.mxu2 %vm488_vm0, %v1170_v15  ;;  %v677_v38 = vld [vmem:[%s1647_s3 + $0x90] sm:$0xff]  ;;  %v1165_v42 = vld [vmem:[%s1409_s29 + $0x18] sm:$0xff]  ;;  %v684_v47 = vld [vmem:[%s1647_s3 + $0xc8] sm:$0xff] }
  0x30   : > { %1155 = vmatmul.msk.bf16.vlgmr.msra.gmra.mxu3 %vm488_vm0, %v1174_v16  ;;  %v681_v40 = vld [vmem:[%s1647_s3 + $0xb0] sm:$0xff]  ;;  %v1169_v43 = vld [vmem:[%s1409_s29 + $0x38] sm:$0xff]  ;;  %v683_v48 = vld [vmem:[%s1647_s3 + $0xc0] sm:$0xff] }
  0x31   : > { %v1173_v44 = vld [vmem:[%s1409_s29 + $0x58] sm:$0xff]  ;;  %v685_v49 = vld [vmem:[%s1647_s3 + $0xd0] sm:$0xff]  ;;  %v687_v50 = vld [vmem:[%s1647_s3 + $0xe0] sm:$0xff] }
  0x32   : > { %v1177_v45 = vld [vmem:[%s1409_s29 + $0x78] sm:$0xff]  ;;  %v688_v52 = vld [vmem:[%s1647_s3 + $0xe8] sm:$0xff]  ;;  %v689_v54 = vld [vmem:[%s1647_s3 + $0xf0] sm:$0xff] }
  0x33   : > { %v682_v46 = vld [vmem:[%s1647_s3 + $0xb8] sm:$0xff]  ;;  %v1552_v15 = vld [vmem:[%s336_s12] ss:$0 sm:$0xff]  ;;  %s1070_s12 = sshll.u32 %s1662_s18, 1  ;;  %vm929_vm3 = vmand %vm927_vm1, %vm928_vm2 }
  0x34   : > { %v686_v51 = vld [vmem:[%s1647_s3 + $0xd8] sm:$0xff]  ;;  %s348_s5 = sadd.s32 %s1070_s12, %s1664_s17 }
  0x35   : > { %728 = vperm.xlu1 %1245, %v666_v17   ;;  %723 = vperm.xlu0 %1244, %v665_v18   ;;  %v690_v53 = vld [vmem:[%s1647_s3 + $0xf8] sm:$0xff]  ;;  %s349_s7 = scalar_lea.vmem %s1648_s4, %s348_s5 }
  0x37   : > { %733 = vperm.xlu2 %1246, %v667_v19  }
  0x3d   : > { %743 = vperm.xlu1 %1245, %v669_v20   ;;  %738 = vperm.xlu0 %1244, %v668_v21  }
  0x3e   : > { %1144 = vmatmul.msk.bf16.gmra.mxu0 %vm488_vm0, %v1163_v22  ;;  %1148 = vmatmul.msk.bf16.gmra.mxu1 %vm488_vm0, %v1167_v23 }
  0x3f   : > { %748 = vperm.xlu2 %1246, %v670_v26   ;;  %1152 = vmatmul.msk.bf16.gmra.mxu2 %vm488_vm0, %v1171_v24 }
  0x40   : > { %1156 = vmatmul.msk.bf16.gmra.mxu3 %vm488_vm0, %v1175_v25 }
  0x45   : > { %758 = vperm.xlu1 %1245, %v672_v27   ;;  %753 = vperm.xlu0 %1244, %v671_v28  }
  0x47   : > { %763 = vperm.xlu2 %1246, %v673_v29  }
  0x4d   : > { %773 = vperm.xlu1 %1245, %v675_v30   ;;  %768 = vperm.xlu0 %1244, %v674_v31  }
  0x4e   : > { %1145 = vmatmul.msk.bf16.gmra.mxu0 %vm488_vm0, %v1164_v32  ;;  %1149 = vmatmul.msk.bf16.gmra.mxu1 %vm488_vm0, %v1168_v33 }
  0x4f   : > { %778 = vperm.xlu2 %1246, %v676_v36   ;;  %1153 = vmatmul.msk.bf16.gmra.mxu2 %vm488_vm0, %v1172_v34 }
  0x50   : > { %1157 = vmatmul.msk.bf16.gmra.mxu3 %vm488_vm0, %v1176_v35 }
  0x55   : > { %788 = vperm.xlu1 %1245, %v678_v37   ;;  %783 = vperm.xlu0 %1244, %v677_v38  }
  0x57   : > { %793 = vperm.xlu2 %1246, %v679_v39  }
  0x5d   : > { %803 = vperm.xlu1 %1245, %v681_v40   ;;  %798 = vperm.xlu0 %1244, %v680_v41  }
  0x5e   : > { %1146 = vmatmul.msk.bf16.gmra.mxu0 %vm488_vm0, %v1165_v42  ;;  %1150 = vmatmul.msk.bf16.gmra.mxu1 %vm488_vm0, %v1169_v43 }
  0x5f   : > { %808 = vperm.xlu2 %1246, %v682_v46   ;;  %1154 = vmatmul.msk.bf16.gmra.mxu2 %vm488_vm0, %v1173_v44 }
  0x60   : > { %1158 = vmatmul.msk.bf16.gmra.mxu3 %vm488_vm0, %v1177_v45 }
  0x65   : > { %818 = vperm.xlu1 %1245, %v684_v47   ;;  %813 = vperm.xlu0 %1244, %v683_v48  }
  0x67   : > { %823 = vperm.xlu2 %1246, %v685_v49  }
  0x6d   : > { %833 = vperm.xlu1 %1245, %v687_v50   ;;  %828 = vperm.xlu0 %1244, %v686_v51  }
  0x6f   : > { %838 = vperm.xlu2 %1246, %v688_v52  }
  0x75   : > { %848 = vperm.xlu1 %1245, %v690_v53   ;;  %843 = vperm.xlu0 %1244, %v689_v54  }
  0x81   : > { %v714_v62 = vpop.permute.xlu2 %713 }
  0x89   : > { %v719_v4 = vpop.permute.xlu2 %718 }
  0x91   : > { %v734_v12 = vpop.permute.xlu2 %733 }
  0x97   : > { %v694_v57 = vpop.permute.xlu0 %693  ;;  %v704_v58 = vpop.permute.xlu1 %703 }
  0x99   : > { %v749_v25 = vpop.permute.xlu2 %748 }
  0x9f   : > { %v699_v63 = vpop.permute.xlu0 %698  ;;  %v709_v2 = vpop.permute.xlu1 %708 }
  0xa1   : > { %v764_v48 = vpop.permute.xlu2 %763 }
  0xa7   : > { %v724_v5 = vpop.permute.xlu0 %723  ;;  %v729_v8 = vpop.permute.xlu1 %728 }
  0xab   : > { %v546_v55 = vpop.f32.mrf.mxu0  ;;  %v566_v56 = vpop.f32.mrf.mxu1 }
  0xac   : > { %v547_v20 = vadd.f32 %v1552_v15, %v546_v55  ;;  %v567_v50 = vadd.f32 %v1552_v15, %v566_v56 }
  0xae   : > { %v626_v27 = vmax.f32 %v547_v20, 0.0 }
  0xaf   : > { %v1545_v13 = vpop.permute.xlu0 %738  ;;  %v1554_v16 = vpop.permute.xlu1 %743 }
  0xb0   : > { %v851_v37 = vmul.f32 %v694_v57, %v626_v27 }
  0xb2   : > { %v1537_v61 = vpop.f32.mrf.mxu2 }
  0xb3   : > { %v548_v59 = vpop.f32.mrf.mxu0  ;;  %v568_v60 = vpop.f32.mrf.mxu1 }
  0xb4   : > { %v1541_v9 = vpop.f32.mrf.mxu3  ;;  %v549_v18 = vadd.f32 %v1552_v15, %v548_v59  ;;  %v569_v55 = vadd.f32 %v1552_v15, %v568_v60 }
  0xb6   : > { %v627_v23 = vmax.f32 %v549_v18, 0.0  ;;  %v635_v18 = vmax.f32 %v569_v55, 0.0 }
  0xb7   : > { %v1564_v26 = vpop.permute.xlu0 %753  ;;  %v1567_v32 = vpop.permute.xlu1 %758 }
  0xb8   : > { %v852_v31 = vmul.f32 %v699_v63, %v627_v23 }
  0xba   : > { %v1539_v3 = vpop.f32.mrf.mxu2  ;;  %v883_v41 = vadd.f32 %v852_v31, %v851_v37 }
  0xbb   : > { %v551_v0 = vpop.f32.mrf.mxu0  ;;  %v571_v1 = vpop.f32.mrf.mxu1 }
  0xbc   : > { %v1556_v17 = vpop.f32.mrf.mxu3  ;;  %v552_v21 = vadd.f32 %v1552_v15, %v551_v0 }
  0xbe   : > { %v628_v28 = vmax.f32 %v552_v21, 0.0 }
  0xbf   : > { %v769_v49 = vpop.permute.xlu0 %768  ;;  %v774_v63 = vpop.permute.xlu1 %773 }
  0xc0   : > { %v853_v38 = vmul.f32 %v704_v58, %v628_v28 }
  0xc2   : > { %v1543_v10 = vpop.f32.mrf.mxu2  ;;  %v884_v45 = vadd.f32 %v883_v41, %v853_v38  ;;  %v1305_v41 = vmov 0.0  }
  0xc3   : > { %v553_v6 = vpop.f32.mrf.mxu0  ;;  %v573_v7 = vpop.f32.mrf.mxu1  ;;  %355 = vst [vmem:[#allocation2] sm:$0x1] %v1305_v41 }
  0xc4   : > { %v554_v24 = vadd.f32 %v1552_v15, %v553_v6  ;;  %v1570_v35 = vpop.f32.mrf.mxu3  ;;  %v574_v56 = vadd.f32 %v1552_v15, %v573_v7 }
  0xc6   : > { %v629_v33 = vmax.f32 %v554_v24, 0.0  ;;  %v779_v24 = vpop.permute.xlu2 %778  ;;  %v637_v27 = vmax.f32 %v574_v56, 0.0 }
  0xc7   : > { %v784_v28 = vpop.permute.xlu0 %783  ;;  %v789_v37 = vpop.permute.xlu1 %788 }
  0xc8   : > { %v854_v42 = vmul.f32 %v709_v2, %v629_v33  ;;  %v634_v2 = vmax.f32 %v567_v50, 0.0 }
  0xca   : > { %v1561_v22 = vpop.f32.mrf.mxu2  ;;  %v885_v51 = vadd.f32 %v884_v45, %v854_v42  ;;  %v859_v21 = vmul.f32 %v734_v12, %v634_v2  ;;  %v862_v12 = vmul.f32 %v749_v25, %v637_v27  ;;  %v589_v25 = vadd.f32 %v1552_v15, %v1539_v3 }
  0xcb   : > { %v556_v11 = vpop.f32.mrf.mxu0  ;;  %v576_v14 = vpop.f32.mrf.mxu1 }
  0xcc   : > { %v557_v29 = vadd.f32 %v1552_v15, %v556_v11  ;;  %v1578_v0 = vpop.f32.mrf.mxu3  ;;  %v643_v55 = vmax.f32 %v589_v25, 0.0 }
  0xce   : > { %v630_v39 = vmax.f32 %v557_v29, 0.0  ;;  %v860_v29 = vmul.f32 %v1545_v13, %v635_v18  ;;  %v587_v13 = vadd.f32 %v1552_v15, %v1537_v61  ;;  %v794_v50 = vpop.permute.xlu2 %793 }
  0xd0   : > { %v855_v46 = vmul.f32 %v714_v62, %v630_v39  ;;  %v572_v62 = vadd.f32 %v1552_v15, %v571_v1 }
  0xd2   : > { %v1573_v44 = vpop.f32.mrf.mxu2  ;;  %v886_v57 = vadd.f32 %v885_v51, %v855_v46  ;;  %v636_v60 = vmax.f32 %v572_v62, 0.0  ;;  %v799_v51 = vpop.permute.xlu0 %798 }
  0xd3   : > { %v558_v19 = vpop.f32.mrf.mxu0  ;;  %v578_v30 = vpop.f32.mrf.mxu1  ;;  %v597_v62 = vadd.f32 %v1552_v15, %v1573_v44  ;;  %v607_v44 = vadd.f32 %v1552_v15, %v1541_v9  ;;  %v614_v9 = vadd.f32 %v1552_v15, %v1578_v0 }
  0xd4   : > { %v559_v34 = vadd.f32 %v1552_v15, %v558_v19  ;;  %v579_v1 = vadd.f32 %v1552_v15, %v578_v30  ;;  %v861_v7 = vmul.f32 %v1554_v16, %v636_v60  ;;  %v1587_v38 = vpop.f32.mrf.mxu3 }
  0xd6   : > { %v631_v43 = vmax.f32 %v559_v34, 0.0 }
  0xd8   : > { %v856_v52 = vmul.f32 %v719_v4, %v631_v43 }
  0xda   : > { %v887_v6 = vadd.f32 %v886_v57, %v856_v52  ;;  %v598_v20 = vpop.f32.mrf.mxu2  ;;  %v642_v52 = vmax.f32 %v587_v13, 0.0  ;;  %v814_v60 = vpop.permute.xlu0 %813 }
  0xdb   : > { %v561_v36 = vpop.f32.mrf.mxu0  ;;  %v581_v53 = vpop.f32.mrf.mxu1 }
  0xdc   : > { %v562_v40 = vadd.f32 %v1552_v15, %v561_v36  ;;  %v618_v3 = vpop.f32.mrf.mxu3  ;;  %v867_v2 = vmul.f32 %v774_v63, %v642_v52 }
  0xde   : > { %v632_v47 = vmax.f32 %v562_v40, 0.0 }
  0xe0   : > { %v857_v58 = vmul.f32 %v724_v5, %v632_v47  ;;  %v577_v5 = vadd.f32 %v1552_v15, %v576_v14  ;;  %v639_v14 = vmax.f32 %v579_v1, 0.0 }
  0xe2   : > { %v888_v4 = vadd.f32 %v887_v6, %v857_v58  ;;  %v638_v34 = vmax.f32 %v577_v5, 0.0  ;;  %v601_v43 = vpop.f32.mrf.mxu2  ;;  %v864_v45 = vmul.f32 %v1567_v32, %v639_v14  ;;  %v829_v13 = vpop.permute.xlu0 %828 }
  0xe3   : > { %v563_v54 = vpop.f32.mrf.mxu0  ;;  %v583_v33 = vpop.f32.mrf.mxu1 }
  0xe4   : > { %v564_v59 = vadd.f32 %v1552_v15, %v563_v54  ;;  %v584_v40 = vadd.f32 %v1552_v15, %v583_v33  ;;  %v863_v30 = vmul.f32 %v1564_v26, %v638_v34  ;;  %v594_v26 = vadd.f32 %v1552_v15, %v1561_v22 }
  0xe5   : > { %v602_v22 = vadd.f32 %v1552_v15, %v601_v43  ;;  %v653_v43 = vmax.f32 %v614_v9, 0.0 }
  0xe6   : > { %v633_v11 = vmax.f32 %v564_v59, 0.0  ;;  %v641_v46 = vmax.f32 %v584_v40, 0.0  ;;  %v804_v59 = vpop.permute.xlu1 %803  ;;  %v645_v56 = vmax.f32 %v594_v26, 0.0 }
  0xe8   : > { %v858_v19 = vmul.f32 %v729_v8, %v633_v11  ;;  %v582_v8 = vadd.f32 %v1552_v15, %v581_v53  ;;  %v592_v53 = vadd.f32 %v1552_v15, %v1543_v10  ;;  %v866_v57 = vmul.f32 %v769_v49, %v641_v46 }
  0xe9   : > { %v868_v11 = vmul.f32 %v779_v24, %v643_v55  ;;  %v599_v10 = vadd.f32 %v1552_v15, %v598_v20  ;;  %v870_v5 = vmul.f32 %v789_v37, %v645_v56 }
  0xea   : > { %v889_v23 = vadd.f32 %v888_v4, %v858_v19  ;;  %v640_v16 = vmax.f32 %v582_v8, 0.0  ;;  %v644_v32 = vmax.f32 %v592_v53, 0.0  ;;  %v603_v18 = vpop.f32.mrf.mxu2  ;;  %v646_v19 = vmax.f32 %v597_v62, 0.0 }
  0xeb   : > { %v647_v63 = vmax.f32 %v599_v10, 0.0  ;;  %v604_v27 = vadd.f32 %v1552_v15, %v603_v18  ;;  %v650_v8 = vmax.f32 %v607_v44, 0.0 }
  0xec   : > { %v890_v31 = vadd.f32 %v889_v23, %v859_v21  ;;  %v865_v54 = vmul.f32 %v764_v48, %v640_v16  ;;  %v869_v4 = vmul.f32 %v784_v28, %v644_v32  ;;  %v809_v21 = vpop.permute.xlu2 %808  ;;  %v871_v24 = vmul.f32 %v794_v50, %v646_v19 }
  0xed   : > { %v609_v28 = vadd.f32 %v1552_v15, %v1556_v17  ;;  %v872_v33 = vmul.f32 %v799_v51, %v647_v63  ;;  %v617_v17 = vadd.f32 %v1552_v15, %v1587_v38  ;;  %v875_v16 = vmul.f32 %v814_v60, %v650_v8  ;;  %v930_v63 = vld [vmem:[%s349_s7] sm:$0x1] }
  0xee   : > { %v891_v36 = vadd.f32 %v890_v31, %v860_v29  ;;  %v648_v29 = vmax.f32 %v602_v22, 0.0  ;;  %v819_v1 = vpop.permute.xlu1 %818  ;;  %v621_v31 = vpop.f32.mrf.mxu3 }
  0xef   : > { %v651_v14 = vmax.f32 %v609_v28, 0.0  ;;  %v654_v51 = vmax.f32 %v617_v17, 0.0  ;;  %v622_v0 = vadd.f32 %v1552_v15, %v621_v31 }
  0xf0   : > { %v892_v39 = vadd.f32 %v891_v36, %v861_v7  ;;  %v649_v7 = vmax.f32 %v604_v27, 0.0  ;;  %v612_v36 = vadd.f32 %v1552_v15, %v1570_v35  ;;  %v619_v35 = vadd.f32 %v1552_v15, %v618_v3 }
  0xf1   : > { %v876_v25 = vmul.f32 %v819_v1, %v651_v14  ;;  %v656_v26 = vmax.f32 %v622_v0, 0.0 }
  0xf2   : > { %v893_v42 = vadd.f32 %v892_v39, %v862_v12  ;;  %v873_v12 = vmul.f32 %v804_v59, %v648_v29  ;;  %v874_v39 = vmul.f32 %v809_v21, %v649_v7  ;;  %v655_v53 = vmax.f32 %v619_v35, 0.0  ;;  %v844_v59 = vpop.permute.xlu0 %843 }
  0xf3   : > { %v881_v62 = vmul.f32 %v844_v59, %v656_v26 }
  0xf4   : > { %v894_v47 = vadd.f32 %v893_v42, %v863_v30  ;;  %v824_v41 = vpop.permute.xlu2 %823  ;;  %v652_v30 = vmax.f32 %v612_v36, 0.0 }
  0xf6   : > { %v895_v61 = vadd.f32 %v894_v47, %v864_v45  ;;  %v834_v46 = vpop.permute.xlu1 %833  ;;  %v623_v47 = vpop.f32.mrf.mxu3  ;;  %v877_v50 = vmul.f32 %v824_v41, %v652_v30 }
  0xf7   : > { %v624_v55 = vadd.f32 %v1552_v15, %v623_v47  ;;  %v879_v38 = vmul.f32 %v834_v46, %v654_v51 }
  0xf8   : > { %v896_v58 = vadd.f32 %v895_v61, %v865_v54  ;;  %v878_v54 = vmul.f32 %v829_v13, %v653_v43 }
  0xf9   : > { %v657_v3 = vmax.f32 %v624_v55, 0.0 }
  0xfa   : > { %v897_v6 = vadd.f32 %v896_v58, %v866_v57 }
  0xfc   : > { %v898_v48 = vadd.f32 %v897_v6, %v867_v2  ;;  %v839_v58 = vpop.permute.xlu2 %838 }
  0xfd   : > { %v880_v2 = vmul.f32 %v839_v58, %v655_v53 }
  0xfe   : > { %v899_v49 = vadd.f32 %v898_v48, %v868_v11  ;;  %v849_v11 = vpop.permute.xlu1 %848 }
  0xff   : > { %v882_v56 = vmul.f32 %v849_v11, %v657_v3 }
 0x100   : > { %v900_v23 = vadd.f32 %v899_v49, %v869_v4  ;;  %v658_v49 = vld [vmem:[#allocation2] sm:$0x1] }
 0x102   : > { %v901_v20 = vadd.f32 %v900_v23, %v870_v5 }
 0x104   : > { %v902_v34 = vadd.f32 %v901_v20, %v871_v24 }
 0x106   : > { %v903_v37 = vadd.f32 %v902_v34, %v872_v33 }
 0x108   : > { %v904_v40 = vadd.f32 %v903_v37, %v873_v12 }
 0x10a   : > { %v905_v42 = vadd.f32 %v904_v40, %v874_v39 }
 0x10c   : > { %v906_v45 = vadd.f32 %v905_v42, %v875_v16 }
 0x10e   : > { %v907_v52 = vadd.f32 %v906_v45, %v876_v25 }
 0x110   : > { %v908_v61 = vadd.f32 %v907_v52, %v877_v50 }
 0x112   : > { %v909_v57 = vadd.f32 %v908_v61, %v878_v54 }
 0x114   : > { %v910_v32 = vadd.f32 %v909_v57, %v879_v38 }
 0x116   : > { %v911_v6 = vadd.f32 %v910_v32, %v880_v2 }
 0x118   : > { %v912_v10 = vadd.f32 %v911_v6, %v881_v62 }
 0x11a   : > { %v913_v48 = vadd.f32 %v912_v10, %v882_v56 }
 0x11c   : > { %v914_v18 = vrot.slane %v913_v48, 4 }
 0x11e   : > { %v915_v4 = vadd.f32 %v914_v18, %v913_v48 }
 0x120   : > { %v916_v19 = vrot.slane %v915_v4, 2 }
 0x122   : > { %v917_v15 = vadd.f32 %v916_v19, %v915_v4 }
 0x124   : > { %v918_v22 = vrot.slane %v917_v15, 1 }
 0x126   : > { %v919_v21 = vadd.f32 %v918_v22, %v917_v15 }
 0x128   : > { %v920_v60 = vadd.f32 %v919_v21, %v658_v49 }
 0x12a   : > { %921 = vst [vmem:[#allocation2] sm:$0x1] %v920_v60 }
 0x131   : > { %v925_v5 = vld [vmem:[#allocation2] sm:$0x1] }
 0x132   : > { %v926_v23 = vpack.c.bf16 %v925_v5, %v925_v5 }
 0x134   : > { %v931_v27 = vsel %vm929_vm3, %v926_v23, %v930_v63 }
 0x135   : > { %932 = vst [vmem:[%s349_s7] sm:$0x1] %v931_v27 }
 0x136 PF: > { %s14_s21 = sadd.s32 1, %s1302_s21   ;;  %s1649_s15 = smov %s1282_s16 }
 0x137   : > { %p11_p12 = scmp.ge.s32.totalorder %s14_s21, 6   ;;  %s1650_s16 = smov %s1380_s26 }
 0x138   : > { %s1651_s17 = smov %s1294_s19  ;;  %s1652_s18 = smov %s1298_s20 }
 0x139   : > { %s1653_s19 = smov %s1656_s22  ;;  %s1654_s20 = smov %s1660_s23 }
 0x13a   :  { %13 = sbr.rel (!%p11_p12) target bundleno = 4 (0x4), region = 129 }

</bundles_post_ra>
